<compile_context>
chip_gen: v5e
topology: v5e:2x2
jax: 0.10.0
libtpu: 0.0.40
codegen_flags: <defaults>
</compile_context>

<pallas_src>
import jax
import jax.numpy as jnp
from jax.experimental import pallas as pl
from jax.experimental.pallas import tpu as pltpu


def _softmax2d_kernel(x_ref, o_ref):
    """Channel softmax on one (1, C, TILE) tile: C on sublanes, pixels on lanes."""
    x = x_ref[...].astype(jnp.float32)            # (1, C, T)
    m = jnp.max(x, axis=1, keepdims=True)         # (1, 1, T)  cross-sublane max
    e = jnp.exp(x - m)                            # (1, C, T)  lane-dense EUP work
    s = jnp.sum(e, axis=1, keepdims=True)         # (1, 1, T)
    o_ref[...] = (e / s).astype(o_ref.dtype)


def _pick_tile(hw, max_tile=2048):
    """Largest legal lane tile: the whole pixel axis if small, else a
    128-multiple divisor of hw.  Returns (tile, needs_padding)."""
    if hw <= max_tile:
        return hw, False                          # block == full lane dim: legal
    start = max_tile - (max_tile % 128)
    for t in range(start, 0, -128):
        if hw % t == 0:
            return t, False
    return min(1024, start), True


def softmax2d(x):
    """Pallas softmax over the channel axis of an NCHW tensor."""
    n, c, h, w = x.shape
    hw = h * w
    x2 = x.reshape(n, c, hw)                      # contiguous merge, no HBM copy

    tile, need_pad = _pick_tile(hw)
    hw_run = hw
    if need_pad:
        # TODO(synk): rare fallback; an in-kernel masked tail would avoid this
        # extra HBM round-trip of the logits.
        hw_run = pl.cdiv(hw, tile) * tile
        x2 = jnp.pad(x2, ((0, 0), (0, 0), (0, hw_run - hw)))

    grid = (n, hw_run // tile)

    out = pl.pallas_call(
        _softmax2d_kernel,
        out_shape=jax.ShapeDtypeStruct((n, c, hw_run), x.dtype),
        grid_spec=pltpu.PrefetchScalarGridSpec(
            num_scalar_prefetch=0,
            grid=grid,
            in_specs=[pl.BlockSpec((1, c, tile), lambda i, j: (i, 0, j))],
            out_specs=pl.BlockSpec((1, c, tile), lambda i, j: (i, 0, j)),
        ),
        compiler_params=pltpu.CompilerParams(
            dimension_semantics=("parallel", "parallel"),
            vmem_limit_bytes=32 * 1024 * 1024,
        ),
    )(x2)

    if need_pad:
        out = out[:, :, :hw]
    return out.reshape(n, c, h, w)


def classifier_softmax(pred_logits, **_):
    """JAX/Pallas equivalent of ClassifierSoftmax.forward."""
    if pred_logits.ndim == 4:
        pred_prob = softmax2d(pred_logits)
    else:
        pred_prob = softmax2d(pred_logits[None])[0]
    return dict(pred_prob=pred_prob)


if __name__ == "__main__":
    key = jax.random.PRNGKey(0)
    k1, k2 = jax.random.split(key)

    N, C, H, W = 2, 4, 16, 16
    x4 = jax.random.normal(k1, (N, C, H, W), dtype=jnp.float32)

    # 4-D (NCHW) path
    out4 = jax.block_until_ready(classifier_softmax(x4))
    ref4 = jax.nn.softmax(x4, axis=1)
    assert out4["pred_prob"].shape == (N, C, H, W)
    assert jnp.allclose(out4["pred_prob"], ref4, atol=1e-5, rtol=1e-5)
    # rows sum to 1
    assert jnp.allclose(jnp.sum(out4["pred_prob"], axis=1),
                        jnp.ones((N, H, W)), atol=1e-5, rtol=1e-5)

    # 3-D (CHW) path (module unsqueezes, softmaxes, squeezes)
    x3 = jax.random.normal(k2, (C, H, W), dtype=jnp.float32)
    out3 = jax.block_until_ready(classifier_softmax(x3))
    ref3 = jax.nn.softmax(x3, axis=0)
    assert out3["pred_prob"].shape == (C, H, W)
    assert jnp.allclose(out3["pred_prob"], ref3, atol=1e-5, rtol=1e-5)

    # bf16 input stays bf16 through the DMA; upcast happens in-kernel
    xb = x4.astype(jnp.bfloat16)
    outb = jax.block_until_ready(classifier_softmax(xb))
    refb = jax.nn.softmax(xb.astype(jnp.float32), axis=1)
    assert outb["pred_prob"].dtype == jnp.bfloat16
    assert jnp.allclose(outb["pred_prob"].astype(jnp.float32), refb,
                        atol=2e-2, rtol=2e-2)

    print("KERNEL_OK")
</pallas_src>

<mosaic_0001>
module attributes {stable_mosaic.version = 11 : i64} {
  func.func @_softmax2d_kernel(%arg0: i32, %arg1: i32, %arg2: memref<1x4x256xf32, #tpu.memory_space<vmem>>, %arg3: memref<1x4x256xf32, #tpu.memory_space<vmem>>) attributes {dimension_semantics = [#tpu.dimension_semantics<parallel>, #tpu.dimension_semantics<parallel>], iteration_bounds = array<i64: 2, 1>, scalar_prefetch = 0 : i64, scratch_operands = 0 : i64, tpu.core_type = #tpu.core_type<tc>, window_params = [{transform_indices = @transform_0, window_bounds = array<i64: 1, 4, 256>}, {transform_indices = @transform_1, window_bounds = array<i64: 1, 4, 256>}]} {
    %c0 = arith.constant 0 : index
    %c0_0 = arith.constant 0 : index
    %c0_1 = arith.constant 0 : index
    %0 = vector.load %arg2[%c0, %c0_0, %c0_1] : memref<1x4x256xf32, #tpu.memory_space<vmem>>, vector<1x4x256xf32>
    %cst = arith.constant dense<0xFF800000> : vector<1x256xf32>
    %1 = vector.multi_reduction <maximumf>, %0, %cst [1] : vector<1x4x256xf32> to vector<1x256xf32>
    %2 = vector.shape_cast %1 : vector<1x256xf32> to vector<1x1x256xf32>
    %3 = vector.broadcast %2 : vector<1x1x256xf32> to vector<1x4x256xf32>
    %4 = arith.subf %0, %3 : vector<1x4x256xf32>
    %5 = math.exp %4 : vector<1x4x256xf32>
    %cst_2 = arith.constant dense<0.000000e+00> : vector<1x256xf32>
    %6 = vector.multi_reduction <add>, %5, %cst_2 [1] : vector<1x4x256xf32> to vector<1x256xf32>
    %7 = vector.shape_cast %6 : vector<1x256xf32> to vector<1x1x256xf32>
    %8 = vector.broadcast %7 : vector<1x1x256xf32> to vector<1x4x256xf32>
    %9 = arith.divf %5, %8 : vector<1x4x256xf32>
    %c0_3 = arith.constant 0 : index
    %c0_4 = arith.constant 0 : index
    %c0_5 = arith.constant 0 : index
    %10 = vector.load %arg3[%c0_3, %c0_4, %c0_5] : memref<1x4x256xf32, #tpu.memory_space<vmem>>, vector<1x4x256xf32>
    tpu.vector_store %arg3[%c0_3, %c0_4, %c0_5], %9 {strides = array<i32>} : memref<1x4x256xf32, #tpu.memory_space<vmem>>, vector<1x4x256xf32>,
    return
  }
  func.func @transform_0(%arg0: i32, %arg1: i32) -> (i32, i32, i32) {
    %c0_i32 = arith.constant 0 : i32
    %c0_i32_0 = arith.constant 0 : i32
    return %arg0, %c0_i32, %arg1 : i32, i32, i32
  }
  func.func @transform_1(%arg0: i32, %arg1: i32) -> (i32, i32, i32) {
    %c0_i32 = arith.constant 0 : i32
    %c0_i32_0 = arith.constant 0 : i32
    return %arg0, %c0_i32, %arg1 : i32, i32, i32
  }
}

</mosaic_0001>

<bundles_post_ra>
// kernel: tpu_custom_call.1
= control target key start
LH: loop header
LB: loop body
LE: loop exit
PB: predicated region body
PF: predicated region fallthrough
CT: control target
= control target key end

     0   :  { %6 = vsyncpa [#allocation3], 0  ;;  %s666_s0 = inlined_call_operand.hbm [shape: f32[2,4,256], index: 0, kind: input, shape index: {}]   ;;  %s667_s1 = inlined_call_operand.hbm [shape: f32[2,4,256], index: 1, kind: output, shape index: {}]  }
   0x1   :  { %8 = vsyncpa [#allocation3 + $0x1], 0 }
   0x2   :  { %9 = vsyncpa [#allocation4], 0 }
   0x3   :  { %11 = vsyncpa [#allocation4 + $0x1], 0  ;;  %s536_s6 = smov 0   ;;  %s538_s7 = smov 0  }
   0x4   :  { %s540_s8 = smov 0   ;;  %s542_s9 = smov 0  }
   0x5   :  { %s544_s10 = smov 0   ;;  %s546_s11 = smov 0  }
   0x6 LB: > { %s329_s12 = sadd.s32 4294967295, %s524_s11   ;;  %s330_s13 = sadd.s32 4294967294, %s524_s11   ;;  %s524_s11 = sphi %s546_s11, %s17_s11   ;;  %s520_s10 = sphi %s544_s10, %s676_s10   ;;  %s516_s9 = sphi %s542_s9, %s675_s9   ;;  %s512_s8 = sphi %s540_s8, %s674_s8   ;;  %s508_s7 = sphi %s538_s7, %s673_s7   ;;  %s504_s6 = sphi %s536_s6, %s672_s6  }
   0x7   : > { %s29_s14 = sadd.s32 1, %s520_s10  ;;  %s38_s15 = sadd.s32 1, %s512_s8 }
   0x8   : > { %p31_p0 = scmp.ge.s32.totalorder %s29_s14, 2  ;;  %p45_p1 = scmp.ne.s32.totalorder %s512_s8, %s508_s7 }
   0x9   : > { %p46_p2 = scmp.eq.s32.totalorder %s524_s11, 0  ;;  %p51_p3 = scmp.ne.s32.totalorder %s508_s7, %s504_s6 }
   0xa   : > { %s678_s14 = smov (%p31_p0, %s29_s14), 0  ;;  %p52_p5 = scmp.eq.s32.totalorder %s329_s12, 0 }
   0xb   : > { %p577_p4 = por %p46_p2, %p45_p1  ;;  %s33_s17 = ssub.s32 %s520_s10, %s678_s14 }
   0xc   : > { %p77_p6 = scmp.eq.s32.totalorder %s329_s12, 1  ;;  %p36_p7 = scmp.eq.s32.totalorder %s33_s17, 0 }
   0xd   : > { %p583_p8 = por %p52_p5, %p51_p3  ;;  %p83_p10 = scmp.eq.s32.totalorder %s330_s13, 1 }
   0xe   : > { %p587_p9 = por %p77_p6, %p45_p1  ;;  %p332_p12 = scmp.ge.s32.totalorder %s524_s11, 2 }
   0xf   : > { %s592_s20 = scalar_select %p36_p7, %s512_s8, %s38_s15  }
  0x10   : > { %p594_p11 = por %p83_p10, %p51_p3  ;;  %p358_p13 = scmp.lt.s32.totalorder %s524_s11, 2 }
  0x11   : > { %s103_s22 = sand.u32 1, %s512_s8   ;;  %s344_s24 = sshll.u32 %s520_s10, 3 }
  0x12   : > { %s333_s23 = sshll.u32 %s103_s22, 3  ;;  %s114_s27 = scalar_lea.hbm %s666_s0, %s344_s24 }
  0x13   : > { %s107_s28 = scalar_lea.vmem [#allocation2], %s333_s23  ;;  %s116_s30 = sshll.u32 %s114_s27, 4  ;;  %s117_s30 = int_to_ptr.hbm [resolvable:$true] %s116_s30 }
  0x14   : > { %s118_s29 = sshll.u32 %s107_s28, 4  ;;  %p351_p0 = pnand %p358_p13, %p577_p4  ;;  %s119_s29 = int_to_ptr.vmem [resolvable:$true] %s118_s29 }
  0x15   : > { %p336_p1 = scmp.ge.s32.totalorder %s524_s11, 1  ;;  %p123_p2 = scmp.lt.s32.totalorder %s524_s11, 3 }
  0x16   : > { %s104_s2 = scalar_lea.sflag [#allocation3], %s103_s22 }
  0x17   : > { %353 = dma.hbm_to_vmem [thread:$0]  (!%p351_p0), %s117_s30, 128, %s119_s29, %s104_s2  }
  0x18   : > { %p124_p3 = pnand %p336_p1, %p123_p2 }
  0x19   : > { %s610_s3 = sand.u32 (!%p124_p3), 1, %s508_s7  }
  0x1a   : > { %127 = sbr.rel (%p124_p3) target bundleno = 114 (0x72), region = 24  ;;  %s337_s4 = sshll.u32 (!%p124_p3), %s610_s3, 3 }
  0x1b   : > { %s130_s5 = scalar_lea.sflag (!%p124_p3), [#allocation3], %s610_s3  ;;  %s133_s12 = scalar_lea.vmem (!%p124_p3), [#allocation2], %s337_s4 }
  0x1f   : > { %495 = dma.done.wait (%p583_p8), %s130_s5, 128  }
  0x20   : > { %497 = vsyncadd (%p583_p8), %s130_s5, 4294967168  ;;  %v155_v0 = vld [vmem:[%s133_s12] sm:$0xff]  ;;  %vm162_vm0 = vcmask 1043456   ;;  %s345_s13 = sshll.u32 %s516_s9, 3  ;;  %s152_s18 = scalar_lea.vmem [#allocation5], %s337_s4 }
  0x21   : > { %157 = vst [vmem:[#allocation1] ss:$2 sm:$0xff] %v155_v0  ;;  %s240_s17 = scalar_lea.hbm %s667_s1, %s345_s13  ;;  %s242_s22 = sshll.u32 %s152_s18, 4  ;;  %s243_s22 = int_to_ptr.vmem [resolvable:$true] %s242_s22 }
  0x22   : > { %s244_s23 = sshll.u32 %s240_s17, 4  ;;  %s227_s9 = scalar_lea.sflag [#allocation4], %s610_s3  ;;  %s245_s23 = int_to_ptr.hbm [resolvable:$true] %s244_s23 }
  0x23   : > { %s456_s24 = sshra.s32 %s245_s23, 4  ;;  %s462_s28 = scalar_lea.hbm %s667_s1, 16  ;;  %s457_s24 = int_to_ptr.hbm [resolvable:$true] %s456_s24 }
  0x24   : > { %s458_s25 = scalar_lea.hbm %s457_s24, 8  ;;  %p463_p7 = scmp.lt.s32.totalorder %s457_s24, %s667_s1 }
  0x25   : > { %p459_p4 = scmp.ne.s32.totalorder %s457_s24, %s458_s25  ;;  %p464_p8 = scmp.lt.s32.totalorder %s462_s28, %s458_s25 }
  0x27   : > { %p460_p5 = pnand %p459_p4, %p587_p9  ;;  %p465_p10 = por %p464_p8, %p463_p7 }
  0x28   : > { %v158_v1 = vld.sshfl [vmem:[#allocation1] sm:$0xff pattern:$0x75316420]  ;;  %v159_v2 = vld.sshfl [vmem:[#allocation1 + $0x8] sm:$0xff pattern:$0x75316420] }
  0x29   : > { %v163_v3 = vsel %vm162_vm0, %v158_v1, -inf  ;;  %v170_v4 = vsel %vm162_vm0, %v159_v2, -inf  ;;  %p461_p6 = pneg %p460_p5 }
  0x2a   : > { %v164_v5 = vrot.slane %v163_v3, 4  ;;  %v171_v6 = vrot.slane %v170_v4, 4 }
  0x2b   : > { %p466_p13 = pnand %p465_p10, %p461_p6 }
  0x2c   : > { %v165_v7 = vmax.f32 %v163_v3, %v164_v5  ;;  %v172_v8 = vmax.f32 %v170_v4, %v171_v6 }
  0x2e   : > { %v166_v9 = vrot.slane %v165_v7, 2  ;;  %v173_v10 = vrot.slane %v172_v8, 2 }
  0x30   : > { %v167_v11 = vmax.f32 %v165_v7, %v166_v9  ;;  %v174_v12 = vmax.f32 %v172_v8, %v173_v10 }
  0x32   : > { %v168_v13 = vrot.slane %v167_v11, 1  ;;  %v175_v14 = vrot.slane %v174_v12, 1 }
  0x34   : > { %v176_v15 = vmax.f32 %v174_v12, %v175_v14  ;;  %v169_v16 = vmax.f32 %v167_v11, %v168_v13 }
  0x36   : > { %v179_v17 = vrot.slane %v176_v15, 4 }
  0x38   : > { %v180_v18 = vsel %vm162_vm0, %v169_v16, %v179_v17 }
  0x39   : > { %v182_v19 = vsub.f32 %v155_v0, %v180_v18 }
  0x3b   : > { %v183_v20 = vmul.f32 1.442695, %v182_v19 }
  0x3d   : > { %408 = vpow2.f32 %v183_v20 }
  0x43   : > { %v409_v21 = vpop.eup %408 }
  0x44   : > { %186 = vst [vmem:[#allocation1] ss:$2 sm:$0xff] %v409_v21 }
  0x4b   : > { %v187_v22 = vld.sshfl [vmem:[#allocation1] sm:$0xff pattern:$0x75316420]  ;;  %v188_v23 = vld.sshfl [vmem:[#allocation1 + $0x8] sm:$0xff pattern:$0x75316420] }
  0x4c   : > { %v191_v24 = vsel %vm162_vm0, %v187_v22, 0.0  ;;  %v198_v25 = vsel %vm162_vm0, %v188_v23, 0.0 }
  0x4d   : > { %v192_v26 = vrot.slane %v191_v24, 4  ;;  %v199_v27 = vrot.slane %v198_v25, 4 }
  0x4f   : > { %v193_v28 = vadd.f32 %v192_v26, %v191_v24  ;;  %v200_v29 = vadd.f32 %v199_v27, %v198_v25 }
  0x51   : > { %v194_v30 = vrot.slane %v193_v28, 2  ;;  %v201_v31 = vrot.slane %v200_v29, 2 }
  0x53   : > { %v195_v32 = vadd.f32 %v194_v30, %v193_v28  ;;  %v202_v33 = vadd.f32 %v201_v31, %v200_v29 }
  0x55   : > { %v196_v34 = vrot.slane %v195_v32, 1  ;;  %v203_v35 = vrot.slane %v202_v33, 1 }
  0x57   : > { %v204_v36 = vadd.f32 %v203_v35, %v202_v33  ;;  %v197_v37 = vadd.f32 %v196_v34, %v195_v32 }
  0x59   : > { %v207_v38 = vrot.slane %v204_v36, 4 }
  0x5b   : > { %v208_v39 = vsel %vm162_vm0, %v197_v37, %v207_v38 }
  0x5c   : > { %410 = vrcp.f32 %v208_v39  ;;  %v221_v43 = vand.u32 2147483648, %v208_v39  ;;  %v219_v45 = vand.u32 2147483647, %v208_v39  ;;  %vm215_vm2 = vweird.f32 %v208_v39 }
  0x5e   : > { %v222_v47 = vor.u32 1.1754944e-38, %v221_v43  ;;  %vm220_vm4 = vcmp.eq.f32.partialorder %v219_v45, 8.507059e+37 }
  0x62   : > { %v411_v40 = vpop.eup %410 }
  0x63   : > { %v211_v41 = vmul.f32 %v411_v40, %v208_v39  ;;  %vm216_vm1 = vweird.f32 %v411_v40 }
  0x64   : > { %vm217_vm3 = vmor %vm215_vm2, %vm216_vm1 }
  0x65   : > { %v212_v42 = vsub.f32 1.0, %v211_v41 }
  0x67   : > { %v213_v44 = vmul.f32 %v411_v40, %v212_v42 }
  0x69   : > { %v214_v46 = vadd.f32 %v411_v40, %v213_v44 }
  0x6b   : > { %v218_v48 = vsel %vm217_vm3, %v411_v40, %v214_v46 }
  0x6c   : > { %v223_v49 = vsel %vm220_vm4, %v222_v47, %v218_v48 }
  0x6d   : > { %v224_v50 = vmul.f32 %v409_v21, %v223_v49 }
  0x6f   : > { %225 = vst [vmem:[%s152_s18] sm:$0xff] %v224_v50 }
  0x70   : > { %469 = shalt.err (!%p466_p13)
}
  0x71   : > { %348 = dma.vmem_to_hbm [thread:$0]  (%p587_p9), %s243_s22, 128, %s245_s23, %s227_s9  }
  0x72 PF: > { %s256_s2 = sand.u32 1, %s504_s6   ;;  %p355_p0 = pnand %p332_p12, %p594_p11 }
  0x73   : > { %s257_s3 = scalar_lea.sflag [#allocation4], %s256_s2 }
  0x74   : > { %p356_p1 = pneg %p355_p0 }
  0x76   : > { %499 = dma.done.wait (%p356_p1), %s257_s3, 128  }
  0x77   : > { %501 = vsyncadd (%p356_p1), %s257_s3, 4294967168  ;;  %s17_s11 = sadd.s32 1, %s524_s11   ;;  %s672_s6 = smov %s508_s7 }
  0x78   : > { %p14_p2 = scmp.ge.s32.totalorder %s17_s11, 4   ;;  %s673_s7 = smov %s512_s8 }
  0x79   : > { %s674_s8 = smov %s592_s20  ;;  %s675_s9 = smov %s520_s10 }
  0x7a   : > { %s676_s10 = smov %s678_s14  ;;  %16 = sbr.rel (!%p14_p2) target bundleno = 6 (0x6), region = 69 }
  0x7f   :  { %263 = vsyncpa [#allocation3], 1 }
  0x80   :  { %265 = vsyncpa [#allocation3 + $0x1], 1 }
  0x81   :  { %266 = vsyncpa [#allocation4], 1 }
  0x82   :  { %268 = vsyncpa [#allocation4 + $0x1], 1 }

</bundles_post_ra>
